<compile_context>
chip_gen: v7x
topology: tpu7x:2x2x1
jax: 0.10.0
libtpu: 0.0.40
codegen_flags: <defaults>
</compile_context>

<pallas_src>
import jax
import jax.numpy as jnp
from jax import lax
from jax.experimental import pallas as pl
from jax.experimental.pallas import tpu as pltpu

NEG_SLOPE = 0.01     # F.leaky_relu default
NEG_INF = -1e30
LANE = 128


def _round_up(x, m):
    return ((x + m - 1) // m) * m


def _vmem_limit_bytes():
    """Generation-aware scoped-VMEM limit (≈48 MiB on v7x, ≈96-100 MiB on v5e/v6e)."""
    try:
        cap = pltpu.get_tpu_info().vmem_capacity_bytes
    except Exception:
        cap = 64 * 1024 * 1024
    return min((cap * 3) // 4, 100 * 1024 * 1024)


def _pick_tiles(n):
    """Pass-2 (dst-row tile, src-col tile).

    Small graphs: a single block (block_shape == full extent is always legal).
    Large graphs: tile_r stays >= 128 (never shrink the MXU M-dim / parallel axis);
    the source-column tile bounds the [T, Tk] softmax temporaries and the streamed
    adj / z / s_src blocks, so the per-step working set (~3-5 MB) fits every
    generation's scoped VMEM regardless of N."""
    if n <= 1024:
        return n, n
    if n <= 2048:
        return 256, 512
    return 256, 1024


# ---------------------------------------------------------------------------
# Pass 1: z = h @ W, per-node attention logits s_src, s_dst.
# ---------------------------------------------------------------------------
def _gat_precompute_kernel(h_ref, w_ref, a_src_ref, a_dst_ref,
                           z_ref, s_src_ref, s_dst_ref):
    # z = h @ W on the MXU; h is cast to bf16 in-kernel so the f32 h is read from HBM
    # exactly once (no separate XLA cast pass writing + re-reading a bf16 copy).
    z = jnp.dot(h_ref[...].astype(jnp.bfloat16), w_ref[...],
                preferred_element_type=jnp.float32)
    # Destination logit: VPU multiply + XLU lane reduce, natural (T, 1) layout.
    s_dst_ref[...] = jnp.sum(z * a_dst_ref[...], axis=-1, keepdims=True)
    # Source logit emitted already transposed / lane-dense as a (1, T) row (contraction
    # over the feature axis of both operands), so pass 2 streams it column-tiled with
    # unmasked loads and no inter-pass relayout kernel is needed.
    s_src_ref[...] = lax.dot_general(
        a_src_ref[...], z, (((1,), (1,)), ((), ())),
        preferred_element_type=jnp.float32)
    z_ref[...] = z.astype(jnp.bfloat16)


# ---------------------------------------------------------------------------
# Pass 2: masked online softmax over incoming edges + aggregation (flash-style).
# Grid: (dst-row tiles [parallel], src-col tiles [arbitrary / reduction]).
# ---------------------------------------------------------------------------
def _gat_row_kernel(s_dst_ref, s_src_ref, adj_ref, z_ref, out_ref,
                    m_sc, l_sc, acc_sc):
    k = pl.program_id(1)

    @pl.when(k == 0)
    def _():
        m_sc[...] = jnp.full_like(m_sc, NEG_INF)
        l_sc[...] = jnp.zeros_like(l_sc)
        acc_sc[...] = jnp.zeros_like(acc_sc)

    # e[i, j] = leaky_relu(s_src[j] + s_dst[i]) for this (dst-row, src-col) tile.  f32.
    e = s_dst_ref[...] + s_src_ref[...]                  # (tile_r, tile_k) via broadcast
    e = jnp.where(e > 0, e, NEG_SLOPE * e)

    # Online softmax update.  The running max uses the *unmasked* e (softmax is
    # shift-invariant, so any m >= the masked values is exact); masking is applied once,
    # to p, by comparing the packed int8 adjacency directly (no i8->i32 unpack).
    m_prev = m_sc[...]
    m_new = jnp.maximum(m_prev, jnp.max(e, axis=1, keepdims=True))
    p = jnp.where(adj_ref[...] != 0, jnp.exp(e - m_new), 0.0)

    a = jnp.exp(m_prev - m_new)                          # rescale previous partials
    l_sc[...] = a * l_sc[...] + jnp.sum(p, axis=1, keepdims=True)
    acc_sc[...] = a * acc_sc[...] + jnp.dot(p.astype(jnp.bfloat16), z_ref[...],
                                            preferred_element_type=jnp.float32)
    m_sc[...] = m_new

    @pl.when(k == pl.num_programs(1) - 1)
    def _():
        # Deferred normalization: one [T, D] scale with an EUP reciprocal.  Rows with no
        # incoming edge (only possible without self-loops) have acc == 0 -> output 0.
        denom = jnp.maximum(l_sc[...], 1e-30)
        out_ref[...] = acc_sc[...] * pl.reciprocal(denom, approx=True)


def gat_layer_pallas(h, W, a_src, a_dst, adj):
    """Single-head GAT forward.

    h: [N, in_dim] f32, W: [in_dim, D] f32 (fc weight transposed vs PyTorch),
    a_src / a_dst: [D, 1] f32 (split attn_fc weight), adj: [N, N] 0/1 (int8/bool
    strongly preferred), adj[i, j] = 1 iff there is an edge j -> i.
    Returns out: [N, D] f32.
    """
    n, in_dim = h.shape
    d = W.shape[1]
    d_pad = _round_up(d, LANE)

    tile_r, tile_k = _pick_tiles(n)       # pass-2 dst-row / src-col tiles
    tile_1 = tile_k                       # pass-1 row tile (decoupled from tile_r)
    n_pad_k = _round_up(n, tile_k)        # padded source/node axis (tile_r | tile_k)
    n_pad_r = _round_up(n, tile_r)        # padded destination axis (<= n_pad_k)

    vmem_limit = _vmem_limit_bytes()
    params1 = pltpu.CompilerParams(dimension_semantics=("parallel",),
                                   vmem_limit_bytes=vmem_limit)
    params2 = pltpu.CompilerParams(dimension_semantics=("parallel", "arbitrary"),
                                   vmem_limit_bytes=vmem_limit)

    # MXU / lane-friendly operand layouts.  Feature-dim zero padding is exact (sliced off
    # at the end); node-dim zero padding only adds rows/cols that the adjacency masks out.
    w_pad = jnp.zeros((in_dim, d_pad), jnp.bfloat16).at[:, :d].set(W.astype(jnp.bfloat16))
    a_src_row = jnp.zeros((1, d_pad), jnp.float32).at[:, :d].set(a_src.reshape(1, d))
    a_dst_row = jnp.zeros((1, d_pad), jnp.float32).at[:, :d].set(a_dst.reshape(1, d))

    h_pad = h if n_pad_k == n else jnp.pad(h, ((0, n_pad_k - n), (0, 0)))
    adj_i8 = adj if adj.dtype == jnp.int8 else (adj != 0).astype(jnp.int8)
    if n_pad_r != n or n_pad_k != n:
        adj_i8 = jnp.pad(adj_i8, ((0, n_pad_r - n), (0, n_pad_k - n)))

    # --------------------------- Pass 1 ---------------------------
    grid1 = (n_pad_k // tile_1,)
    cost1 = pl.CostEstimate(
        flops=2 * n_pad_k * in_dim * d_pad + 4 * n_pad_k * d_pad,
        transcendentals=0,
        bytes_accessed=(n_pad_k * in_dim * 4 + in_dim * d_pad * 2
                        + n_pad_k * d_pad * 2 + n_pad_k * 8))
    z_bf16, s_src_row, s_dst = pl.pallas_call(
        _gat_precompute_kernel,
        grid=grid1,
        in_specs=[
            pl.BlockSpec((tile_1, in_dim), lambda i: (i, 0)),   # h tile (f32, cast in-kernel)
            pl.BlockSpec((in_dim, d_pad), lambda i: (0, 0)),    # W (tiny, resident)
            pl.BlockSpec((1, d_pad), lambda i: (0, 0)),         # a_src row
            pl.BlockSpec((1, d_pad), lambda i: (0, 0)),         # a_dst row
        ],
        out_specs=(
            pl.BlockSpec((tile_1, d_pad), lambda i: (i, 0)),    # z (bf16)
            pl.BlockSpec((1, tile_1), lambda i: (0, i)),        # s_src, lane-dense (1, N)
            pl.BlockSpec((tile_1, 1), lambda i: (i, 0)),        # s_dst
        ),
        out_shape=(
            jax.ShapeDtypeStruct((n_pad_k, d_pad), jnp.bfloat16),
            jax.ShapeDtypeStruct((1, n_pad_k), jnp.float32),
            jax.ShapeDtypeStruct((n_pad_k, 1), jnp.float32),
        ),
        compiler_params=params1,
        cost_estimate=cost1,
    )(h_pad, w_pad, a_src_row, a_dst_row)

    # --------------------------- Pass 2 ---------------------------
    grid2 = (n_pad_r // tile_r, n_pad_k // tile_k)
    cost2 = pl.CostEstimate(
        flops=2 * n_pad_r * n_pad_k * d_pad + 10 * n_pad_r * n_pad_k,
        transcendentals=n_pad_r * n_pad_k,
        bytes_accessed=(n_pad_r * n_pad_k                                   # adj (int8)
                        + grid2[0] * (n_pad_k * d_pad * 2 + n_pad_k * 4)    # z + s_src per row tile
                        + n_pad_r * 4 + n_pad_r * d_pad * 4))               # s_dst + out
    out_pad = pl.pallas_call(
        _gat_row_kernel,
        grid=grid2,
        in_specs=[
            pl.BlockSpec((tile_r, 1), lambda i, k: (i, 0)),       # s_dst row tile
            pl.BlockSpec((1, tile_k), lambda i, k: (0, k)),       # s_src col tile
            pl.BlockSpec((tile_r, tile_k), lambda i, k: (i, k)),  # adj tile (int8)
            pl.BlockSpec((tile_k, d_pad), lambda i, k: (k, 0)),   # z col tile (bf16)
        ],
        out_specs=pl.BlockSpec((tile_r, d_pad), lambda i, k: (i, 0)),
        out_shape=jax.ShapeDtypeStruct((n_pad_r, d_pad), jnp.float32),
        scratch_shapes=[
            pltpu.VMEM((tile_r, 1), jnp.float32),      # running max m
            pltpu.VMEM((tile_r, 1), jnp.float32),      # running denominator l
            pltpu.VMEM((tile_r, d_pad), jnp.float32),  # unnormalized accumulator
        ],
        compiler_params=params2,
        cost_estimate=cost2,
    )(s_dst, s_src_row, adj_i8, z_bf16)

    return out_pad[:n, :d]


def gat_layer_ref(h, W, a_src, a_dst, adj):
    """Pure-JAX (f32) reference mirroring the DGL semantics."""
    z = h @ W
    s_src = z @ a_src          # [N, 1]
    s_dst = z @ a_dst          # [N, 1]
    e = s_dst + s_src.T
    e = jnp.where(e > 0, e, NEG_SLOPE * e)
    mask = adj > 0
    e = jnp.where(mask, e, NEG_INF)
    m = jnp.max(e, axis=1, keepdims=True)
    p = jnp.exp(e - m)
    p = jnp.where(mask, p, 0.0)
    alpha = p / jnp.sum(p, axis=1, keepdims=True)
    return alpha @ z


if __name__ == "__main__":
    N, IN_DIM, OUT_DIM = 8, 16, 32

    key = jax.random.PRNGKey(0)
    k_h, k_w, k_a, k_adj = jax.random.split(key, 4)

    # node features
    h = jax.random.normal(k_h, (N, IN_DIM), dtype=jnp.float32)

    # deterministic parameter init (shapes from nn.Linear in __init__)
    #   fc.weight      : [OUT_DIM, IN_DIM]   -> stored transposed as W [IN_DIM, OUT_DIM]
    #   attn_fc.weight : [1, 2*OUT_DIM]      -> split into a_src, a_dst [OUT_DIM, 1]
    W = jax.random.normal(k_w, (IN_DIM, OUT_DIM), dtype=jnp.float32) * 0.1
    a_full = jax.random.normal(k_a, (2 * OUT_DIM,), dtype=jnp.float32) * 0.1
    a_src = a_full[:OUT_DIM].reshape(OUT_DIM, 1)
    a_dst = a_full[OUT_DIM:].reshape(OUT_DIM, 1)

    # random int8 adjacency with self-loops (every node has >= 1 incoming edge,
    # matching DGL graphs where reduce_func sees a non-empty mailbox)
    adj = (jax.random.uniform(k_adj, (N, N)) < 0.4)
    adj = (adj | jnp.eye(N, dtype=bool)).astype(jnp.int8)

    out = gat_layer_pallas(h, W, a_src, a_dst, adj)
    jax.block_until_ready(out)

    ref = gat_layer_ref(h, W, a_src, a_dst, adj.astype(jnp.float32))
    assert out.shape == (N, OUT_DIM)
    # bf16 MXU operands + approx reciprocal -> slightly relaxed tolerance vs pure-f32 ref.
    assert jnp.allclose(out, ref, atol=2e-2, rtol=2e-2), "mismatch vs reference"

    print("KERNEL_OK")
</pallas_src>

<mosaic_0001>
module attributes {stable_mosaic.version = 11 : i64} {
  func.func @_gat_precompute_kernel(%arg0: i32, %arg1: memref<8x16xf32, #tpu.memory_space<vmem>>, %arg2: memref<16x128xbf16, #tpu.memory_space<vmem>>, %arg3: memref<1x128xf32, #tpu.memory_space<vmem>>, %arg4: memref<1x128xf32, #tpu.memory_space<vmem>>, %arg5: memref<8x128xbf16, #tpu.memory_space<vmem>>, %arg6: memref<1x8xf32, #tpu.memory_space<vmem>>, %arg7: memref<8x1xf32, #tpu.memory_space<vmem>>) attributes {dimension_semantics = [#tpu.dimension_semantics<parallel>], iteration_bounds = array<i64: 1>, scalar_prefetch = 0 : i64, scratch_operands = 0 : i64, tpu.core_type = #tpu.core_type<tc>, window_params = [{transform_indices = @transform_0, window_bounds = array<i64: 8, 16>}, {pipeline_mode = #tpu.pipeline_mode<synchronous>, transform_indices = @transform_1, window_bounds = array<i64: 16, 128>}, {pipeline_mode = #tpu.pipeline_mode<synchronous>, transform_indices = @transform_2, window_bounds = array<i64: 1, 128>}, {pipeline_mode = #tpu.pipeline_mode<synchronous>, transform_indices = @transform_3, window_bounds = array<i64: 1, 128>}, {transform_indices = @transform_4, window_bounds = array<i64: 8, 128>}, {transform_indices = @transform_5, window_bounds = array<i64: 1, 8>}, {transform_indices = @transform_6, window_bounds = array<i64: 8, 1>}]} {
    %c0 = arith.constant 0 : index
    %c0_0 = arith.constant 0 : index
    %0 = vector.load %arg1[%c0, %c0_0] : memref<8x16xf32, #tpu.memory_space<vmem>>, vector<8x16xf32>
    %1 = arith.truncf %0 : vector<8x16xf32> to vector<8x16xbf16>
    %c0_1 = arith.constant 0 : index
    %c0_2 = arith.constant 0 : index
    %2 = vector.load %arg2[%c0_1, %c0_2] : memref<16x128xbf16, #tpu.memory_space<vmem>>, vector<16x128xbf16>
    %cst = arith.constant dense<0.000000e+00> : vector<8x128xf32>
    %3 = tpu.matmul %1, %2, %cst {dimension_numbers = #tpu.dot_dimension_numbers<[1], [0], [0], [1], [0, 0, 1, 1], [], []>} : vector<8x16xbf16>, vector<16x128xbf16>, vector<8x128xf32> -> vector<8x128xf32>
    %c0_3 = arith.constant 0 : index
    %c0_4 = arith.constant 0 : index
    %4 = vector.load %arg4[%c0_3, %c0_4] : memref<1x128xf32, #tpu.memory_space<vmem>>, vector<1x128xf32>
    %5 = vector.broadcast %4 : vector<1x128xf32> to vector<8x128xf32>
    %6 = arith.mulf %3, %5 : vector<8x128xf32>
    %cst_5 = arith.constant dense<0.000000e+00> : vector<8xf32>
    %7 = vector.multi_reduction <add>, %6, %cst_5 [1] : vector<8x128xf32> to vector<8xf32>
    %8 = vector.shape_cast %7 : vector<8xf32> to vector<8x1xf32>
    %c0_6 = arith.constant 0 : index
    %c0_7 = arith.constant 0 : index
    %9 = vector.load %arg7[%c0_6, %c0_7] : memref<8x1xf32, #tpu.memory_space<vmem>>, vector<8x1xf32>
    tpu.vector_store %arg7[%c0_6, %c0_7], %8 {strides = array<i32>} : memref<8x1xf32, #tpu.memory_space<vmem>>, vector<8x1xf32>,
    %c0_8 = arith.constant 0 : index
    %c0_9 = arith.constant 0 : index
    %10 = vector.load %arg3[%c0_8, %c0_9] : memref<1x128xf32, #tpu.memory_space<vmem>>, vector<1x128xf32>
    %cst_10 = arith.constant dense<0.000000e+00> : vector<1x8xf32>
    %11 = tpu.matmul %10, %3, %cst_10 {dimension_numbers = #tpu.dot_dimension_numbers<[1], [1], [0], [0], [0, 0, 1, 0], [], []>} : vector<1x128xf32>, vector<8x128xf32>, vector<1x8xf32> -> vector<1x8xf32>
    %c0_11 = arith.constant 0 : index
    %c0_12 = arith.constant 0 : index
    %12 = vector.load %arg6[%c0_11, %c0_12] : memref<1x8xf32, #tpu.memory_space<vmem>>, vector<1x8xf32>
    tpu.vector_store %arg6[%c0_11, %c0_12], %11 {strides = array<i32>} : memref<1x8xf32, #tpu.memory_space<vmem>>, vector<1x8xf32>,
    %13 = arith.truncf %3 : vector<8x128xf32> to vector<8x128xbf16>
    %c0_13 = arith.constant 0 : index
    %c0_14 = arith.constant 0 : index
    %14 = vector.load %arg5[%c0_13, %c0_14] : memref<8x128xbf16, #tpu.memory_space<vmem>>, vector<8x128xbf16>
    tpu.vector_store %arg5[%c0_13, %c0_14], %13 {strides = array<i32>} : memref<8x128xbf16, #tpu.memory_space<vmem>>, vector<8x128xbf16>,
    return
  }
  func.func @transform_0(%arg0: i32) -> (i32, i32) {
    %c0_i32 = arith.constant 0 : i32
    %c0_i32_0 = arith.constant 0 : i32
    return %arg0, %c0_i32 : i32, i32
  }
  func.func @transform_1(%arg0: i32) -> (i32, i32) {
    %c0_i32 = arith.constant 0 : i32
    %c0_i32_0 = arith.constant 0 : i32
    %c0_i32_1 = arith.constant 0 : i32
    return %c0_i32, %c0_i32_0 : i32, i32
  }
  func.func @transform_2(%arg0: i32) -> (i32, i32) {
    %c0_i32 = arith.constant 0 : i32
    %c0_i32_0 = arith.constant 0 : i32
    %c0_i32_1 = arith.constant 0 : i32
    return %c0_i32, %c0_i32_0 : i32, i32
  }
  func.func @transform_3(%arg0: i32) -> (i32, i32) {
    %c0_i32 = arith.constant 0 : i32
    %c0_i32_0 = arith.constant 0 : i32
    %c0_i32_1 = arith.constant 0 : i32
    return %c0_i32, %c0_i32_0 : i32, i32
  }
  func.func @transform_4(%arg0: i32) -> (i32, i32) {
    %c0_i32 = arith.constant 0 : i32
    %c0_i32_0 = arith.constant 0 : i32
    return %arg0, %c0_i32 : i32, i32
  }
  func.func @transform_5(%arg0: i32) -> (i32, i32) {
    %c0_i32 = arith.constant 0 : i32
    %c0_i32_0 = arith.constant 0 : i32
    return %c0_i32, %arg0 : i32, i32
  }
  func.func @transform_6(%arg0: i32) -> (i32, i32) {
    %c0_i32 = arith.constant 0 : i32
    %c0_i32_0 = arith.constant 0 : i32
    return %arg0, %c0_i32 : i32, i32
  }
}

</mosaic_0001>

<bundles_post_ra>
// kernel: tpu_custom_call.1
= control target key start
LH: loop header
LB: loop body
LE: loop exit
PB: predicated region body
PF: predicated region fallthrough
CT: control target
= control target key end

     0   :  { %12 = vsyncpa [#allocation3], 0  ;;  %s454_s0 = inlined_call_operand.hbm [shape: f32[8,16], index: 0, kind: input, shape index: {}]   ;;  %s455_s1 = inlined_call_operand.hbm [shape: bf16[16,128], index: 1, kind: input, shape index: {}]   ;;  %s456_s2 = inlined_call_operand.vmem [shape: f32[1,128], index: 2, kind: input, shape index: {}]   ;;  %s457_s3 = inlined_call_operand.vmem [shape: f32[1,128], index: 3, kind: input, shape index: {}]   ;;  %s458_s4 = inlined_call_operand.hbm [shape: bf16[8,128], index: 4, kind: output, shape index: {0}]   ;;  %s459_s5 = inlined_call_operand.hbm [shape: f32[1,8], index: 5, kind: output, shape index: {1}]   ;;  %s460_s6 = inlined_call_operand.vmem [shape: f32[8,1], index: 6, kind: output, shape index: {2}]  }
   0x1   :  { %13 = vsyncpa [#allocation6], 0 }
   0x2   :  { %14 = vsyncpa [#allocation4], 0 }
   0x3   :  { %15 = vsyncpa [#allocation9], 0  ;;  %s347_s21 = smov [#allocation2]   ;;  %s348_s23 = smov [#allocation5]  }
   0x4   :  { %s22_s22 = sshll.u32 %s347_s21, 4  ;;  %s31_s24 = sshll.u32 %s348_s23, 4  ;;  %s23_s22 = int_to_ptr.vmem [resolvable:$true] %s22_s22  ;;  %s390_s24 = int_to_ptr.vmem [resolvable:$true] %s31_s24 }
   0x5   :  { %s251_s27 = scalar_lea.hbm %s454_s0, 128 }
   0x6   :  { %p252_p0 = scmp.ne.s32.totalorder %s454_s0, %s251_s27  ;;  %p255_p1 = scmp.lt.u32.totalorder %s251_s27, %s454_s0 }
   0x8   :  { %p257_p2 = pnand %p255_p1, %p252_p0 }
   0xa   :  { %260 = shalt.err (!%p257_p2)
}
   0xb   :  { %s261_s8 = scalar_lea.vmem %s23_s22, 128  ;;  %p266_p4 = scmp.lt.s32.totalorder %s23_s22, %s23_s22 }
   0xc   :  { %p262_p3 = scmp.ne.s32.totalorder %s23_s22, %s261_s8  ;;  %p267_p5 = scmp.lt.s32.totalorder %s261_s8, %s261_s8 }
   0xe   :  { %p268_p6 = por %p267_p5, %p266_p4 }
  0x10   :  { %p269_p7 = pnand %p268_p6, %p262_p3 }
  0x12   :  { %272 = shalt.err (!%p269_p7)
}
  0x13   :  { %25 = dma.hbm_to_vmem [thread:$0]  %s454_s0, 128, %s23_s22, [#allocation3]  }
  0x14   :  { %s273_s13 = scalar_lea.hbm %s455_s1, 128 }
  0x15   :  { %p274_p8 = scmp.ne.s32.totalorder %s455_s1, %s273_s13  ;;  %p277_p9 = scmp.lt.u32.totalorder %s273_s13, %s455_s1 }
  0x17   :  { %p279_p10 = pnand %p277_p9, %p274_p8 }
  0x19   :  { %282 = shalt.err (!%p279_p10)
}
  0x1a   :  { %s283_s18 = scalar_lea.vmem %s390_s24, 128  ;;  %p288_p12 = scmp.lt.s32.totalorder %s390_s24, %s390_s24 }
  0x1b   :  { %p284_p11 = scmp.ne.s32.totalorder %s390_s24, %s283_s18  ;;  %p289_p13 = scmp.lt.s32.totalorder %s283_s18, %s283_s18 }
  0x1d   :  { %p290_p0 = por %p289_p13, %p288_p12 }
  0x1f   :  { %p291_p1 = pnand %p290_p0, %p284_p11 }
  0x21   :  { %294 = shalt.err (!%p291_p1)
}
  0x22   :  { %s349_s0 = smov 64   ;;  %s350_s19 = smov 4  }
  0x23   :  { %37 = dma.hbm_to_vmem [thread:$0]  %s455_s1, 128, %s390_s24, [#allocation6], %s349_s0, %s349_s0, %s350_s19  }
  0x24   :  { %339 = dma.done.wait [#allocation3], 128  }
  0x25   :  { %340 = vsyncadd [#allocation3], 4294967168 }
  0x26   :  { %341 = dma.done.wait [#allocation6], 128  }
  0x27   :  { %342 = vsyncadd [#allocation6], 4294967168  ;;  %v351_v0 = vmov 0.0   ;;  %vm352_vm0 = vmmov 0   ;;  %v250_v1 = vld [vmem:[#allocation5] sm:$0xff]   ;;  %v49_v2 = vld [vmem:[#allocation2] sm:$0xff] }
  0x28   :  { %231 = vmatprep.subr.bf16.mxu0 %v351_v0  ;;  %233 = vmatprep.mubr.msk.bf16.mxu0 %vm352_vm0, %v351_v0  ;;  %v50_v3 = vpack.c.bf16 %v49_v2, %v49_v2  ;;  %vm59_vm1 = vcmask 130048   ;;  %v226_v4 = vld [vmem:[%s457_s3] ss:$0 sm:$0xff]  ;;  %s353_s25 = smov [#allocation7]  }
  0x29   :  { %237 = vmatprep.subr.mxu1 %v351_v0  ;;  %239 = vmatprep.mubr.msk.f32.mxu1 %vm352_vm0, %v351_v0  ;;  %v115_v9 = vld [vmem:[%s456_s2] sm:$0x1]  ;;  %s196_s26 = sshll.u32 %s353_s25, 4  ;;  %s197_s26 = int_to_ptr.vmem [resolvable:$true] %s196_s26 }
  0x2a   :  { %232 = vmatpush3.bf16.msra.mxu0 %v250_v1  ;;  %s295_s27 = scalar_lea.vmem %s197_s26, 64  ;;  %p300_p3 = scmp.lt.s32.totalorder %s197_s26, %s197_s26 }
  0x2b   :  { %p296_p2 = scmp.ne.s32.totalorder %s197_s26, %s295_s27  ;;  %p301_p4 = scmp.lt.s32.totalorder %s295_s27, %s295_s27 }
  0x2d   :  { %234 = vmatmul.mubr.msk.bf16.vlgmr.msra.gmra.mrb[0].mxu0 %vm59_vm1, %v50_v3  ;;  %p302_p5 = por %p301_p4, %p300_p3 }
  0x2f   :  { %p303_p6 = pnand %p302_p5, %p296_p2 }
 0x100   :  { %v97_v5 = vpop.f32.mrb[0].mxu0 }
 0x101   :  { %v188_v6 = vpack.c.bf16 %v97_v5, %v97_v5  ;;  %v235_v7 = vpop.f32.mrb[1].mxu0  ;;  %238 = vmatpush3.xpose.msra.mxu1 %v97_v5  ;;  %v110_v8 = vmul.f32 %v226_v4, %v97_v5 }
 0x102   :  { %v100_v10 = vpop.f32.mrb[2].mxu0 }
 0x103   :  { %189 = vst [vmem:[#allocation7] sm:$0xf] %v188_v6  ;;  %v236_v11 = vpop.f32.mrb[3].mxu0  ;;  %111 = vadd.xlane.f32.xlu0 %v110_v8 }
 0x104   :  { %240 = vmatmul.mubr.f32.vlgmr.msra.gmra.mrb[0].mxu1 %v115_v9 }
 0x105   :  { %306 = shalt.err (!%p303_p6)
}
 0x106   :  { %s307_s29 = scalar_lea.hbm %s458_s4, 64 }
 0x107   :  { %p308_p7 = scmp.ne.s32.totalorder %s458_s4, %s307_s29  ;;  %p311_p8 = scmp.lt.u32.totalorder %s307_s29, %s458_s4 }
 0x109   :  { %p313_p9 = pnand %p311_p8, %p308_p7 }
 0x10b   :  { %316 = shalt.err (!%p313_p9)
}
 0x10c   :  { %199 = dma.vmem_to_hbm [thread:$0]  %s197_s26, 64, %s458_s4, [#allocation4]   ;;  %vm113_vm2 = vcmask 7168   ;;  %vm186_vm3 = vcmask 57344  }
 0x10d   :  { %s354_s13 = smov [#allocation8]  }
 0x10e   :  { %s206_s14 = sshll.u32 %s354_s13, 4  ;;  %s207_s14 = int_to_ptr.vmem [resolvable:$true] %s206_s14 }
 0x10f   :  { %s317_s15 = scalar_lea.vmem %s207_s14, 16  ;;  %s321_s16 = scalar_lea.vmem %s207_s14, 32 }
 0x110   :  { %p318_p10 = scmp.ne.s32.totalorder %s207_s14, %s317_s15  ;;  %p322_p11 = scmp.lt.s32.totalorder %s207_s14, %s207_s14 }
 0x111   :  { %p323_p12 = scmp.lt.s32.totalorder %s321_s16, %s317_s15 }
 0x113   :  { %p324_p13 = por %p323_p12, %p322_p11 }
 0x115   :  { %p325_p0 = pnand %p324_p13, %p318_p10 }
 0x190   :  { %v112_v12 = vpop.xlane.xlu0 %111 }
 0x191   :  { %114 = vst.msk [vmem:[%s460_s6] sm:$0xff] %vm113_vm2, %v112_v12 }
 0x1d7   :  { %v182_v13 = vpop.f32.mrb[0].mxu1 }
 0x1d8   :  { %v241_v14 = vpop.f32.mrb[1].mxu1  ;;  %187 = vst.msk [vmem:[#allocation8] sm:$0x1] %vm186_vm3, %v182_v13 }
 0x1d9   :  { %328 = shalt.err (!%p325_p0)
}
 0x1da   :  { %s329_s18 = scalar_lea.hbm %s459_s5, 16 }
 0x1db   :  { %p330_p1 = scmp.ne.s32.totalorder %s459_s5, %s329_s18  ;;  %p333_p2 = scmp.lt.u32.totalorder %s329_s18, %s459_s5 }
 0x1dd   :  { %p335_p3 = pnand %p333_p2, %p330_p1 }
 0x1df   :  { %338 = shalt.err (!%p335_p3)
}
 0x1e0   :  { %209 = dma.vmem_to_hbm [thread:$0]  %s207_s14, 16, %s459_s5, [#allocation9]  }
 0x1e1   :  { %343 = dma.done.wait [#allocation4], 64  }
 0x1e2   :  { %344 = vsyncadd [#allocation4], 4294967232 }
 0x1e3   :  { %345 = dma.done.wait [#allocation9], 16  }
 0x1e4   :  { %346 = vsyncadd [#allocation9], 4294967280 }
 0x1e5   :  { %220 = vsyncpa [#allocation3], 1 }
 0x1e6   :  { %221 = vsyncpa [#allocation6], 1 }
 0x1e7   :  { %222 = vsyncpa [#allocation4], 1 }
 0x1e8   :  { %223 = vsyncpa [#allocation9], 1 }

</bundles_post_ra>
